<compile_context>
chip_gen: v6e
topology: v6e:2x2x1
jax: 0.10.0
libtpu: 0.0.40
codegen_flags: <defaults>
</compile_context>

<pallas_src>
import jax
import jax.numpy as jnp
from jax.experimental import pallas as pl
from jax.experimental.pallas import tpu as pltpu


def _round_up(x, m):
    return ((x + m - 1) // m) * m


def _tpu_config():
    """Generation-aware limits (falls back to safe defaults if queries fail)."""
    kind = ""
    try:
        kind = jax.devices()[0].device_kind.lower()
    except Exception:
        pass
    is_v7x = "v7" in kind
    is_v5e = ("v5 lite" in kind) or ("v5e" in kind) or ("v5litepod" in kind)
    try:
        vmem_cap = int(pltpu.get_tpu_info().vmem_capacity_bytes)
    except Exception:
        vmem_cap = (64 << 20) if is_v7x else (128 << 20)
    # Never request more than ~75% of physical VMEM (<=48 MiB on v7x, <=96 MiB else).
    vmem_limit_cap = min(100 << 20, (vmem_cap * 3) // 4)
    return dict(is_v7x=is_v7x, is_v5e=is_v5e,
                vmem_cap=vmem_cap, vmem_limit_cap=vmem_limit_cap)


def _pad_lane_dim(d, cfg):
    """MXU-friendly lane padding: 128 on v5e; 256 on v6e/v7x when padding is cheap."""
    p128 = _round_up(d, 128)
    if cfg["is_v5e"]:
        return p128                       # v5e MXU is 4x128x128 -> 128 is full width
    p256 = _round_up(d, 256)              # v6e/v7x MXU is 2x256x256
    return p256 if p256 * 8 <= p128 * 9 else p128   # only if extra padding <= 12.5%


def _decoder_kernel(z_ref, w1_ref, b1_ref, w2_ref, b2_ref, out_ref):
    # Layer 1: (TB, z_dim) @ (z_dim, Hp); K is tiny and unpadded, kept in f32.
    h = jnp.dot(z_ref[...], w1_ref[...], preferred_element_type=jnp.float32)
    h = jnp.maximum(h + b1_ref[...], 0.0)                       # bias + ReLU in f32
    # Layer 2 (dominant): bf16 MXU operands, f32 accumulation.
    o = jnp.dot(h.astype(w2_ref.dtype), w2_ref[...],
                preferred_element_type=jnp.float32)
    out_ref[...] = jax.nn.sigmoid(o + b2_ref[...]).astype(out_ref.dtype)


def pad_params(w1, b1, w2, b2):
    """Zero-pad hidden/output (lane) dims to MXU-friendly multiples.

    W1/b1 stay f32 (first matmul has tiny K and is cheap); W2 is stored bf16
    (dominant matmul, f32 accumulation in-kernel). Padding is numerically
    transparent: padded hidden units have zero weight+bias (ReLU(0)=0 feeds zero
    W2 rows) and padded output columns are sliced off in the wrapper.
    """
    cfg = _tpu_config()
    z_dim, hidden = w1.shape
    out_dim = w2.shape[1]
    Hp = _pad_lane_dim(hidden, cfg)
    Op = _pad_lane_dim(out_dim, cfg)
    w1p = jnp.zeros((z_dim, Hp), jnp.float32).at[:, :hidden].set(w1)
    b1p = jnp.zeros((1, Hp), jnp.float32).at[:, :hidden].set(b1)
    w2p = jnp.zeros((Hp, Op), jnp.bfloat16).at[:hidden, :out_dim].set(w2.astype(jnp.bfloat16))
    b2p = jnp.zeros((1, Op), jnp.float32).at[:, :out_dim].set(b2)
    return w1p, b1p, w2p, b2p


def decoder_forward(z, padded_params, output_dim, *, tile_b_max=512):
    """Full decoder forward as one batch-tiled Pallas TPU kernel.

    z:             (B, z_dim) float32 (unpadded lane dim)
    padded_params: (w1p, b1p, w2p, b2p) from pad_params
    returns        (B, output_dim) float32 in [0, 1]
    """
    w1p, b1p, w2p, b2p = padded_params
    B, z_dim = z.shape
    Hp = w1p.shape[1]
    Op = w2p.shape[1]
    cfg = _tpu_config()

    weight_bytes = (w1p.size * w1p.dtype.itemsize + b1p.size * b1p.dtype.itemsize +
                    w2p.size * w2p.dtype.itemsize + b2p.size * b2p.dtype.itemsize)

    def tile_bytes(tb):   # double-buffered z-in + out tiles per grid step
        return 2 * tb * z_dim * 4 + 2 * tb * Op * 4

    # Batch tiling: sublane-aligned, as large as the (generation-aware) VMEM budget allows.
    budget = cfg["vmem_cap"] // 2 - (4 << 20)   # stay within ~half of physical VMEM
    tile_b = min(tile_b_max, _round_up(max(B, 8), 8))
    while tile_b > 8 and weight_bytes + tile_bytes(tile_b) > budget:
        tile_b = max(8, _round_up(tile_b // 2, 8))
    B_pad = _round_up(max(B, 8), tile_b)

    # v7x has 2 TensorCores: a 1-step grid would idle one of them.
    if cfg["is_v7x"] and B_pad == tile_b and B_pad > 64:
        tile_b = _round_up(pl.cdiv(B_pad, 2), 8)
        B_pad = _round_up(B_pad, tile_b)
    grid = (B_pad // tile_b,)

    # Pad the batch only when needed (no lane-dim pad, no wrapper-side cast pass).
    z_in = z if B_pad == B else jnp.pad(z, ((0, B_pad - B), (0, 0)))

    vmem_limit = min(cfg["vmem_limit_cap"],
                     max(2 * weight_bytes + tile_bytes(tile_b) + (4 << 20), 16 << 20))
    compiler_params = pltpu.CompilerParams(
        dimension_semantics=("parallel",), vmem_limit_bytes=int(vmem_limit))

    def run(single_buffer_weights):
        def resident(shape):
            if single_buffer_weights:
                return pl.BlockSpec(shape, lambda i: (0, 0),
                                    pipeline_mode=pl.Buffered(1))
            return pl.BlockSpec(shape, lambda i: (0, 0))

        return pl.pallas_call(
            _decoder_kernel,
            out_shape=jax.ShapeDtypeStruct((B_pad, Op), jnp.float32),
            grid=grid,
            in_specs=[
                pl.BlockSpec((tile_b, z_dim), lambda i: (i, 0)),   # z tile (unpadded lanes)
                resident((z_dim, Hp)),                             # W1 resident
                resident((1, Hp)),                                 # b1 resident
                resident((Hp, Op)),                                # W2 resident
                resident((1, Op)),                                 # b2 resident
            ],
            out_specs=pl.BlockSpec((tile_b, Op), lambda i: (i, 0)),
            compiler_params=compiler_params,
        )(z_in, w1p, b1p, w2p, b2p)

    try:
        out_padded = jax.block_until_ready(run(True))
    except Exception:
        # TODO(synk): fall back to default double-buffered resident weights if this
        # runtime rejects pl.Buffered(1) on a constant-index BlockSpec.
        out_padded = jax.block_until_ready(run(False))

    if B_pad == B and Op == output_dim:
        return out_padded                      # already aligned: skip the extra copy
    return out_padded[:B, :output_dim]


def init_params(key, z_dim, hidden_dim, output_dim):
    """Deterministic synthetic parameters (nn.Linear-style init, stored (in, out))."""
    k1, k2, k3, k4 = jax.random.split(key, 4)
    s1 = 1.0 / jnp.sqrt(z_dim)
    s2 = 1.0 / jnp.sqrt(hidden_dim)
    w1 = jax.random.uniform(k1, (z_dim, hidden_dim), jnp.float32, -s1, s1)
    b1 = jax.random.uniform(k2, (1, hidden_dim), jnp.float32, -s1, s1)
    w2 = jax.random.uniform(k3, (hidden_dim, output_dim), jnp.float32, -s2, s2)
    b2 = jax.random.uniform(k4, (1, output_dim), jnp.float32, -s2, s2)
    return w1, b1, w2, b2


def reference_forward(z, w1, b1, w2, b2):
    h = jnp.maximum(z @ w1 + b1, 0.0)
    return jax.nn.sigmoid(h @ w2 + b2)


if __name__ == "__main__":
    key = jax.random.PRNGKey(0)
    k_z, k_p = jax.random.split(key)

    # Small shapes consistent with the module's constructor signature.
    batch, z_dim, hidden_dim, output_dim = 8, 8, 32, 64

    z = jax.random.normal(k_z, (batch, z_dim), jnp.float32)
    w1, b1, w2, b2 = init_params(k_p, z_dim, hidden_dim, output_dim)
    padded_params = pad_params(w1, b1, w2, b2)

    out = decoder_forward(z, padded_params, output_dim)
    out = jax.block_until_ready(out)

    ref = reference_forward(z, w1, b1, w2, b2)
    assert out.shape == (batch, output_dim)
    # bf16 operands on the second matmul (f32 accumulation) => loosened tolerance.
    assert jnp.allclose(out, ref, atol=2e-2, rtol=2e-2)

    print("KERNEL_OK")
</pallas_src>

<mosaic_0001>
module attributes {stable_mosaic.version = 11 : i64} {
  func.func @_decoder_kernel(%arg0: i32, %arg1: memref<8x8xf32, #tpu.memory_space<vmem>>, %arg2: memref<8x128xf32, #tpu.memory_space<vmem>>, %arg3: memref<1x128xf32, #tpu.memory_space<vmem>>, %arg4: memref<128x128xbf16, #tpu.memory_space<vmem>>, %arg5: memref<1x128xf32, #tpu.memory_space<vmem>>, %arg6: memref<8x128xf32, #tpu.memory_space<vmem>>) attributes {dimension_semantics = [#tpu.dimension_semantics<parallel>], iteration_bounds = array<i64: 1>, scalar_prefetch = 0 : i64, scratch_operands = 0 : i64, tpu.core_type = #tpu.core_type<tc>, window_params = [{transform_indices = @transform_0, window_bounds = array<i64: 8, 8>}, {pipeline_mode = #tpu.pipeline_mode<synchronous>, transform_indices = @transform_1, window_bounds = array<i64: 8, 128>}, {pipeline_mode = #tpu.pipeline_mode<synchronous>, transform_indices = @transform_2, window_bounds = array<i64: 1, 128>}, {pipeline_mode = #tpu.pipeline_mode<synchronous>, transform_indices = @transform_3, window_bounds = array<i64: 128, 128>}, {pipeline_mode = #tpu.pipeline_mode<synchronous>, transform_indices = @transform_4, window_bounds = array<i64: 1, 128>}, {transform_indices = @transform_5, window_bounds = array<i64: 8, 128>}]} {
    %c0 = arith.constant 0 : index
    %c0_0 = arith.constant 0 : index
    %0 = vector.load %arg1[%c0, %c0_0] : memref<8x8xf32, #tpu.memory_space<vmem>>, vector<8x8xf32>
    %c0_1 = arith.constant 0 : index
    %c0_2 = arith.constant 0 : index
    %1 = vector.load %arg2[%c0_1, %c0_2] : memref<8x128xf32, #tpu.memory_space<vmem>>, vector<8x128xf32>
    %cst = arith.constant dense<0.000000e+00> : vector<8x128xf32>
    %2 = tpu.matmul %0, %1, %cst {dimension_numbers = #tpu.dot_dimension_numbers<[1], [0], [0], [1], [0, 0, 1, 1], [], []>} : vector<8x8xf32>, vector<8x128xf32>, vector<8x128xf32> -> vector<8x128xf32>
    %c0_3 = arith.constant 0 : index
    %c0_4 = arith.constant 0 : index
    %3 = vector.load %arg3[%c0_3, %c0_4] : memref<1x128xf32, #tpu.memory_space<vmem>>, vector<1x128xf32>
    %4 = vector.broadcast %3 : vector<1x128xf32> to vector<8x128xf32>
    %5 = arith.addf %2, %4 : vector<8x128xf32>
    %cst_5 = arith.constant 0.000000e+00 : f32
    %6 = vector.broadcast %cst_5 : f32 to vector<8x128xf32>
    %7 = arith.maximumf %5, %6 : vector<8x128xf32>
    %8 = arith.truncf %7 : vector<8x128xf32> to vector<8x128xbf16>
    %c0_6 = arith.constant 0 : index
    %c0_7 = arith.constant 0 : index
    %9 = vector.load %arg4[%c0_6, %c0_7] : memref<128x128xbf16, #tpu.memory_space<vmem>>, vector<128x128xbf16>
    %cst_8 = arith.constant dense<0.000000e+00> : vector<8x128xf32>
    %10 = tpu.matmul %8, %9, %cst_8 {dimension_numbers = #tpu.dot_dimension_numbers<[1], [0], [0], [1], [0, 0, 1, 1], [], []>} : vector<8x128xbf16>, vector<128x128xbf16>, vector<8x128xf32> -> vector<8x128xf32>
    %c0_9 = arith.constant 0 : index
    %c0_10 = arith.constant 0 : index
    %11 = vector.load %arg5[%c0_9, %c0_10] : memref<1x128xf32, #tpu.memory_space<vmem>>, vector<1x128xf32>
    %12 = vector.broadcast %11 : vector<1x128xf32> to vector<8x128xf32>
    %13 = arith.addf %10, %12 : vector<8x128xf32>
    %14 = arith.negf %13 : vector<8x128xf32>
    %15 = math.exp %14 : vector<8x128xf32>
    %cst_11 = arith.constant 1.000000e+00 : f32
    %16 = vector.broadcast %cst_11 : f32 to vector<8x128xf32>
    %17 = arith.addf %16, %15 : vector<8x128xf32>
    %18 = arith.divf %16, %17 : vector<8x128xf32>
    %c0_12 = arith.constant 0 : index
    %c0_13 = arith.constant 0 : index
    %19 = vector.load %arg6[%c0_12, %c0_13] : memref<8x128xf32, #tpu.memory_space<vmem>>, vector<8x128xf32>
    tpu.vector_store %arg6[%c0_12, %c0_13], %18 {strides = array<i32>} : memref<8x128xf32, #tpu.memory_space<vmem>>, vector<8x128xf32>,
    return
  }
  func.func @transform_0(%arg0: i32) -> (i32, i32) {
    %c0_i32 = arith.constant 0 : i32
    %c0_i32_0 = arith.constant 0 : i32
    return %arg0, %c0_i32 : i32, i32
  }
  func.func @transform_1(%arg0: i32) -> (i32, i32) {
    %c0_i32 = arith.constant 0 : i32
    %c0_i32_0 = arith.constant 0 : i32
    %c0_i32_1 = arith.constant 0 : i32
    return %c0_i32, %c0_i32_0 : i32, i32
  }
  func.func @transform_2(%arg0: i32) -> (i32, i32) {
    %c0_i32 = arith.constant 0 : i32
    %c0_i32_0 = arith.constant 0 : i32
    %c0_i32_1 = arith.constant 0 : i32
    return %c0_i32, %c0_i32_0 : i32, i32
  }
  func.func @transform_3(%arg0: i32) -> (i32, i32) {
    %c0_i32 = arith.constant 0 : i32
    %c0_i32_0 = arith.constant 0 : i32
    %c0_i32_1 = arith.constant 0 : i32
    return %c0_i32, %c0_i32_0 : i32, i32
  }
  func.func @transform_4(%arg0: i32) -> (i32, i32) {
    %c0_i32 = arith.constant 0 : i32
    %c0_i32_0 = arith.constant 0 : i32
    %c0_i32_1 = arith.constant 0 : i32
    return %c0_i32, %c0_i32_0 : i32, i32
  }
  func.func @transform_5(%arg0: i32) -> (i32, i32) {
    %c0_i32 = arith.constant 0 : i32
    %c0_i32_0 = arith.constant 0 : i32
    return %arg0, %c0_i32 : i32, i32
  }
}

module attributes {stable_mosaic.version = 11 : i64} {
  func.func @_decoder_kernel(%arg0: i32, %arg1: memref<8x8xf32, #tpu.memory_space<vmem>>, %arg2: memref<8x128xf32, #tpu.memory_space<vmem>>, %arg3: memref<1x128xf32, #tpu.memory_space<vmem>>, %arg4: memref<128x128xbf16, #tpu.memory_space<vmem>>, %arg5: memref<1x128xf32, #tpu.memory_space<vmem>>, %arg6: memref<8x128xf32, #tpu.memory_space<vmem>>) attributes {dimension_semantics = [#tpu.dimension_semantics<parallel>], iteration_bounds = array<i64: 1>, scalar_prefetch = 0 : i64, scratch_operands = 0 : i64, tpu.core_type = #tpu.core_type<tc>, window_params = [{transform_indices = @transform_0, window_bounds = array<i64: 8, 8>}, {pipeline_mode = #tpu.pipeline_mode<synchronous>, transform_indices = @transform_1, window_bounds = array<i64: 8, 128>}, {pipeline_mode = #tpu.pipeline_mode<synchronous>, transform_indices = @transform_2, window_bounds = array<i64: 1, 128>}, {pipeline_mode = #tpu.pipeline_mode<synchronous>, transform_indices = @transform_3, window_bounds = array<i64: 128, 128>}, {pipeline_mode = #tpu.pipeline_mode<synchronous>, transform_indices = @transform_4, window_bounds = array<i64: 1, 128>}, {transform_indices = @transform_5, window_bounds = array<i64: 8, 128>}]} {
    %c0 = arith.constant 0 : index
    %c0_0 = arith.constant 0 : index
    %0 = vector.load %arg1[%c0, %c0_0] : memref<8x8xf32, #tpu.memory_space<vmem>>, vector<8x8xf32>
    %c0_1 = arith.constant 0 : index
    %c0_2 = arith.constant 0 : index
    %1 = vector.load %arg2[%c0_1, %c0_2] : memref<8x128xf32, #tpu.memory_space<vmem>>, vector<8x128xf32>
    %cst = arith.constant dense<0.000000e+00> : vector<8x128xf32>
    %2 = tpu.matmul %0, %1, %cst {dimension_numbers = #tpu.dot_dimension_numbers<[1], [0], [0], [1], [0, 0, 1, 1], [], []>} : vector<8x8xf32>, vector<8x128xf32>, vector<8x128xf32> -> vector<8x128xf32>
    %c0_3 = arith.constant 0 : index
    %c0_4 = arith.constant 0 : index
    %3 = vector.load %arg3[%c0_3, %c0_4] : memref<1x128xf32, #tpu.memory_space<vmem>>, vector<1x128xf32>
    %4 = vector.broadcast %3 : vector<1x128xf32> to vector<8x128xf32>
    %5 = arith.addf %2, %4 : vector<8x128xf32>
    %cst_5 = arith.constant 0.000000e+00 : f32
    %6 = vector.broadcast %cst_5 : f32 to vector<8x128xf32>
    %7 = arith.maximumf %5, %6 : vector<8x128xf32>
    %8 = arith.truncf %7 : vector<8x128xf32> to vector<8x128xbf16>
    %c0_6 = arith.constant 0 : index
    %c0_7 = arith.constant 0 : index
    %9 = vector.load %arg4[%c0_6, %c0_7] : memref<128x128xbf16, #tpu.memory_space<vmem>>, vector<128x128xbf16>
    %cst_8 = arith.constant dense<0.000000e+00> : vector<8x128xf32>
    %10 = tpu.matmul %8, %9, %cst_8 {dimension_numbers = #tpu.dot_dimension_numbers<[1], [0], [0], [1], [0, 0, 1, 1], [], []>} : vector<8x128xbf16>, vector<128x128xbf16>, vector<8x128xf32> -> vector<8x128xf32>
    %c0_9 = arith.constant 0 : index
    %c0_10 = arith.constant 0 : index
    %11 = vector.load %arg5[%c0_9, %c0_10] : memref<1x128xf32, #tpu.memory_space<vmem>>, vector<1x128xf32>
    %12 = vector.broadcast %11 : vector<1x128xf32> to vector<8x128xf32>
    %13 = arith.addf %10, %12 : vector<8x128xf32>
    %14 = arith.negf %13 : vector<8x128xf32>
    %15 = math.exp %14 : vector<8x128xf32>
    %cst_11 = arith.constant 1.000000e+00 : f32
    %16 = vector.broadcast %cst_11 : f32 to vector<8x128xf32>
    %17 = arith.addf %16, %15 : vector<8x128xf32>
    %18 = arith.divf %16, %17 : vector<8x128xf32>
    %c0_12 = arith.constant 0 : index
    %c0_13 = arith.constant 0 : index
    %19 = vector.load %arg6[%c0_12, %c0_13] : memref<8x128xf32, #tpu.memory_space<vmem>>, vector<8x128xf32>
    tpu.vector_store %arg6[%c0_12, %c0_13], %18 {strides = array<i32>} : memref<8x128xf32, #tpu.memory_space<vmem>>, vector<8x128xf32>,
    return
  }
  func.func @transform_0(%arg0: i32) -> (i32, i32) {
    %c0_i32 = arith.constant 0 : i32
    %c0_i32_0 = arith.constant 0 : i32
    return %arg0, %c0_i32 : i32, i32
  }
  func.func @transform_1(%arg0: i32) -> (i32, i32) {
    %c0_i32 = arith.constant 0 : i32
    %c0_i32_0 = arith.constant 0 : i32
    %c0_i32_1 = arith.constant 0 : i32
    return %c0_i32, %c0_i32_0 : i32, i32
  }
  func.func @transform_2(%arg0: i32) -> (i32, i32) {
    %c0_i32 = arith.constant 0 : i32
    %c0_i32_0 = arith.constant 0 : i32
    %c0_i32_1 = arith.constant 0 : i32
    return %c0_i32, %c0_i32_0 : i32, i32
  }
  func.func @transform_3(%arg0: i32) -> (i32, i32) {
    %c0_i32 = arith.constant 0 : i32
    %c0_i32_0 = arith.constant 0 : i32
    %c0_i32_1 = arith.constant 0 : i32
    return %c0_i32, %c0_i32_0 : i32, i32
  }
  func.func @transform_4(%arg0: i32) -> (i32, i32) {
    %c0_i32 = arith.constant 0 : i32
    %c0_i32_0 = arith.constant 0 : i32
    %c0_i32_1 = arith.constant 0 : i32
    return %c0_i32, %c0_i32_0 : i32, i32
  }
  func.func @transform_5(%arg0: i32) -> (i32, i32) {
    %c0_i32 = arith.constant 0 : i32
    %c0_i32_0 = arith.constant 0 : i32
    return %arg0, %c0_i32 : i32, i32
  }
}

</mosaic_0001>

<bundles_post_ra>
// kernel: tpu_custom_call.1
= control target key start
LH: loop header
LB: loop body
LE: loop exit
PB: predicated region body
PF: predicated region fallthrough
CT: control target
= control target key end

     0   :  { %10 = vsyncpa [#allocation3], 0  ;;  %s488_s0 = inlined_call_operand.hbm [shape: f32[8,8], index: 0, kind: input, shape index: {}]   ;;  %s489_s1 = inlined_call_operand.hbm [shape: f32[8,128], index: 1, kind: input, shape index: {}]   ;;  %s490_s2 = inlined_call_operand.vmem [shape: f32[1,128], index: 2, kind: input, shape index: {}]   ;;  %s491_s3 = inlined_call_operand.hbm [shape: bf16[128,128], index: 3, kind: input, shape index: {}]   ;;  %s492_s4 = inlined_call_operand.vmem [shape: f32[1,128], index: 4, kind: input, shape index: {}]   ;;  %s493_s5 = inlined_call_operand.hbm [shape: f32[8,128], index: 5, kind: output, shape index: {}]  }
   0x1   :  { %11 = vsyncpa [#allocation6], 0 }
   0x2   :  { %12 = vsyncpa [#allocation4], 0  ;;  %s432_s18 = smov [#allocation5]   ;;  %s433_s20 = smov [#allocation2]  }
   0x3   :  { %s29_s19 = sshll.u32 %s432_s18, 4  ;;  %s19_s21 = sshll.u32 %s433_s20, 4  ;;  %s30_s19 = int_to_ptr.vmem [resolvable:$true] %s29_s19  ;;  %s20_s21 = int_to_ptr.vmem [resolvable:$true] %s19_s21 }
   0x4   :  { %s354_s22 = scalar_lea.vmem %s30_s19, 128  ;;  %p359_p1 = scmp.lt.s32.totalorder %s30_s19, %s30_s19 }
   0x5   :  { %p355_p0 = scmp.ne.s32.totalorder %s30_s19, %s354_s22  ;;  %p360_p2 = scmp.lt.s32.totalorder %s354_s22, %s354_s22 }
   0x7   :  { %p361_p3 = por %p360_p2, %p359_p1 }
   0x9   :  { %p362_p4 = pnand %p361_p3, %p355_p0 }
   0xb   :  { %365 = shalt.err (!%p362_p4)
}
   0xc   :  { %32 = dma.hbm_to_vmem [thread:$0]  %s489_s1, 128, %s30_s19, [#allocation6]  }
   0xd   :  { %s374_s25 = scalar_lea.vmem %s20_s21, 128  ;;  %p379_p6 = scmp.lt.s32.totalorder %s20_s21, %s20_s21 }
   0xe   :  { %p375_p5 = scmp.ne.s32.totalorder %s20_s21, %s374_s25  ;;  %p380_p7 = scmp.lt.s32.totalorder %s374_s25, %s374_s25 }
  0x10   :  { %p381_p8 = por %p380_p7, %p379_p6 }
  0x12   :  { %p382_p9 = pnand %p381_p8, %p375_p5 }
  0x14   :  { %385 = shalt.err (!%p382_p9)
}
  0x15   :  { %22 = dma.hbm_to_vmem [thread:$0]  %s488_s0, 128, %s20_s21, [#allocation3]  }
  0x16   :  { %s434_s28 = smov [#allocation7]  }
  0x17   :  { %s40_s29 = sshll.u32 %s434_s28, 4  ;;  %s41_s29 = int_to_ptr.vmem [resolvable:$true] %s40_s29 }
  0x18   :  { %s394_s30 = scalar_lea.vmem %s41_s29, 1024  ;;  %p399_p11 = scmp.lt.s32.totalorder %s41_s29, %s41_s29 }
  0x19   :  { %p395_p10 = scmp.ne.s32.totalorder %s41_s29, %s394_s30  ;;  %p400_p12 = scmp.lt.s32.totalorder %s394_s30, %s394_s30 }
  0x1b   :  { %p401_p13 = por %p400_p12, %p399_p11 }
  0x1d   :  { %p402_p0 = pnand %p401_p13, %p395_p10 }
  0x1f   :  { %405 = shalt.err (!%p402_p0)
}
  0x20   :  { %s435_s1 = smov 64   ;;  %s436_s6 = smov 4  }
  0x21   :  { %46 = dma.hbm_to_vmem [thread:$0]  %s491_s3, 1024, %s41_s29, [#allocation6], %s435_s1, %s435_s1, %s436_s6  }
  0x22   :  { %426 = dma.done.wait [#allocation3], 128  }
  0x23   :  { %427 = vsyncadd [#allocation3], 4294967168 }
  0x24   :  { %428 = dma.done.wait [#allocation6], 1152  }
  0x25   :  { %429 = vsyncadd [#allocation6], 4294966144  ;;  %v437_v0 = vmov 0.0   ;;  %vm438_vm0 = vmmov 0   ;;  %vm68_vm1 = vcmask 64512   ;;  %v60_v1 = vld [vmem:[#allocation5] sm:$0xff] }
  0x26   :  { %301 = vmatprep.subr.mxu0 %v437_v0  ;;  %303 = vmatprep.mubr.msk.f32.mxu0 %vm438_vm0, %v437_v0  ;;  %v59_v2 = vld [vmem:[#allocation2] sm:$0xff]  ;;  %v334_v3 = vld [vmem:[#allocation7 + $0x38] sm:$0xff]   ;;  %v336_v5 = vld [vmem:[#allocation7 + $0x28] sm:$0xff]  }
  0x27   :  { %306 = vmatprep.subr.bf16.mxu1 %v437_v0  ;;  %322 = vmatprep.mubr.msk.bf16.mxu1 %vm438_vm0, %v437_v0  ;;  %v335_v4 = vld [vmem:[#allocation7 + $0x30] sm:$0xff]   ;;  %v337_v6 = vld [vmem:[#allocation7 + $0x20] sm:$0xff]   ;;  %v338_v7 = vld [vmem:[#allocation7 + $0x18] sm:$0xff]  }
  0x28   :  { %302 = vmatpush3.msra.mxu0 %v60_v1  ;;  %307 = vmatpush3.bf16.msra.mxu1 %v334_v3  ;;  %v339_v8 = vld [vmem:[#allocation7 + $0x10] sm:$0xff]   ;;  %v340_v9 = vld [vmem:[#allocation7 + $0x8] sm:$0xff]   ;;  %v341_v10 = vld [vmem:[#allocation7] sm:$0xff]  }
  0x29   :  { %304 = vmatmul.mubr.msk.f32.vlgmr.msra.gmra.mxu0 %vm68_vm1, %v59_v2  ;;  %308 = vmatprep.subr.bf16.mxu1 %v437_v0  ;;  %v278_v11 = vld [vmem:[%s490_s2] ss:$0 sm:$0xff]  ;;  %s439_s2 = smov [#allocation8]  }
  0x2a   :  { %v280_v17 = vld [vmem:[%s492_s4] ss:$0 sm:$0xff]  ;;  %s268_s11 = sshll.u32 %s439_s2, 4  ;;  %s269_s11 = int_to_ptr.vmem [resolvable:$true] %s268_s11 }
  0x2b   :  { %s406_s12 = scalar_lea.vmem %s269_s11, 128  ;;  %p411_p2 = scmp.lt.s32.totalorder %s269_s11, %s269_s11 }
  0x2c   :  { %309 = vmatpush3.bf16.msra.mxu1 %v335_v4  ;;  %p407_p1 = scmp.ne.s32.totalorder %s269_s11, %s406_s12  ;;  %p412_p3 = scmp.lt.s32.totalorder %s406_s12, %s406_s12 }
  0x2d   :  { %310 = vmatprep.subr.bf16.mxu1 %v437_v0 }
  0x2e   :  { %p413_p4 = por %p412_p3, %p411_p2 }
  0x30   :  { %311 = vmatpush3.bf16.msra.mxu1 %v336_v5  ;;  %p414_p5 = pnand %p413_p4, %p407_p1 }
  0x31   :  { %312 = vmatprep.subr.bf16.mxu1 %v437_v0 }
  0x34   :  { %313 = vmatpush3.bf16.msra.mxu1 %v337_v6 }
  0x35   :  { %314 = vmatprep.subr.bf16.mxu1 %v437_v0 }
  0x38   :  { %315 = vmatpush3.bf16.msra.mxu1 %v338_v7 }
  0x39   :  { %316 = vmatprep.subr.bf16.mxu1 %v437_v0 }
  0x3c   :  { %317 = vmatpush3.bf16.msra.mxu1 %v339_v8 }
  0x3d   :  { %318 = vmatprep.subr.bf16.mxu1 %v437_v0 }
  0x40   :  { %319 = vmatpush3.bf16.msra.mxu1 %v340_v9 }
  0x41   :  { %320 = vmatprep.subr.bf16.mxu1 %v437_v0 }
  0x44   :  { %321 = vmatpush3.bf16.msra.mxu1 %v341_v10 }
  0xe9   :  { %v138_v12 = vpop.f32.mrf.mxu0 }
  0xea   :  { %v139_v13 = vadd.f32 %v278_v11, %v138_v12 }
  0xeb   :  { %v305_v14 = vpop.f32.mrf.mxu0 }
  0xec   :  { %v142_v15 = vmax.f32 %v139_v13, 0.0 }
  0xee   :  { %v143_v16 = vpack.c.bf16 %v142_v15, %v142_v15 }
  0xf0   :  { %323 = vmatmul.mubr.bf16.vlgmr.msra.gmra.mxu1 %v143_v16 }
 0x1b0   :  { %v249_v18 = vpop.f32.mrf.mxu1 }
 0x1b1   :  { %v250_v19 = vadd.f32 %v280_v17, %v249_v18 }
 0x1b2   :  { %v324_v20 = vpop.f32.mrf.mxu1 }
 0x1b3   :  { %v289_v21 = vmul.f32 -1.442695, %v250_v19 }
 0x1b4   :  { %v252_v22 = vpop.f32.mrf.mxu1 }
 0x1b5   :  { %342 = vpow2.f32 %v289_v21 }
 0x1b6   :  { %v325_v23 = vpop.f32.mrf.mxu1 }
 0x1c2   :  { %v343_v24 = vpop.eup %342 }
 0x1c3   :  { %v258_v25 = vadd.f32 1.0, %v343_v24 }
 0x1c5   :  { %344 = vrcp.f32 %v258_v25 }
 0x1d2   :  { %v345_v26 = vpop.eup %344 }
 0x1d3   :  { %261 = vst [vmem:[#allocation8] sm:$0xff] %v345_v26 }
 0x1d4   :  { %417 = shalt.err (!%p414_p5)
}
 0x1d5   :  { %271 = dma.vmem_to_hbm [thread:$0]  %s269_s11, 128, %s493_s5, [#allocation4]  }
 0x1d6   :  { %430 = dma.done.wait [#allocation4], 128  }
 0x1d7   :  { %431 = vsyncadd [#allocation4], 4294967168 }
 0x1d8   :  { %275 = vsyncpa [#allocation3], 1 }
 0x1d9   :  { %276 = vsyncpa [#allocation6], 1 }
 0x1da   :  { %277 = vsyncpa [#allocation4], 1 }

// kernel: tpu_custom_call.1
= control target key start
LH: loop header
LB: loop body
LE: loop exit
PB: predicated region body
PF: predicated region fallthrough
CT: control target
= control target key end

     0   :  { %10 = vsyncpa [#allocation3], 0  ;;  %s488_s0 = inlined_call_operand.hbm [shape: f32[8,8], index: 0, kind: input, shape index: {}]   ;;  %s489_s1 = inlined_call_operand.hbm [shape: f32[8,128], index: 1, kind: input, shape index: {}]   ;;  %s490_s2 = inlined_call_operand.vmem [shape: f32[1,128], index: 2, kind: input, shape index: {}]   ;;  %s491_s3 = inlined_call_operand.hbm [shape: bf16[128,128], index: 3, kind: input, shape index: {}]   ;;  %s492_s4 = inlined_call_operand.vmem [shape: f32[1,128], index: 4, kind: input, shape index: {}]   ;;  %s493_s5 = inlined_call_operand.hbm [shape: f32[8,128], index: 5, kind: output, shape index: {}]  }
   0x1   :  { %11 = vsyncpa [#allocation6], 0 }
   0x2   :  { %12 = vsyncpa [#allocation4], 0  ;;  %s432_s18 = smov [#allocation5]   ;;  %s433_s20 = smov [#allocation2]  }
   0x3   :  { %s29_s19 = sshll.u32 %s432_s18, 4  ;;  %s19_s21 = sshll.u32 %s433_s20, 4  ;;  %s30_s19 = int_to_ptr.vmem [resolvable:$true] %s29_s19  ;;  %s20_s21 = int_to_ptr.vmem [resolvable:$true] %s19_s21 }
   0x4   :  { %s354_s22 = scalar_lea.vmem %s30_s19, 128  ;;  %p359_p1 = scmp.lt.s32.totalorder %s30_s19, %s30_s19 }
   0x5   :  { %p355_p0 = scmp.ne.s32.totalorder %s30_s19, %s354_s22  ;;  %p360_p2 = scmp.lt.s32.totalorder %s354_s22, %s354_s22 }
   0x7   :  { %p361_p3 = por %p360_p2, %p359_p1 }
   0x9   :  { %p362_p4 = pnand %p361_p3, %p355_p0 }
   0xb   :  { %365 = shalt.err (!%p362_p4)
}
   0xc   :  { %32 = dma.hbm_to_vmem [thread:$0]  %s489_s1, 128, %s30_s19, [#allocation6]  }
   0xd   :  { %s374_s25 = scalar_lea.vmem %s20_s21, 128  ;;  %p379_p6 = scmp.lt.s32.totalorder %s20_s21, %s20_s21 }
   0xe   :  { %p375_p5 = scmp.ne.s32.totalorder %s20_s21, %s374_s25  ;;  %p380_p7 = scmp.lt.s32.totalorder %s374_s25, %s374_s25 }
  0x10   :  { %p381_p8 = por %p380_p7, %p379_p6 }
  0x12   :  { %p382_p9 = pnand %p381_p8, %p375_p5 }
  0x14   :  { %385 = shalt.err (!%p382_p9)
}
  0x15   :  { %22 = dma.hbm_to_vmem [thread:$0]  %s488_s0, 128, %s20_s21, [#allocation3]  }
  0x16   :  { %s434_s28 = smov [#allocation7]  }
  0x17   :  { %s40_s29 = sshll.u32 %s434_s28, 4  ;;  %s41_s29 = int_to_ptr.vmem [resolvable:$true] %s40_s29 }
  0x18   :  { %s394_s30 = scalar_lea.vmem %s41_s29, 1024  ;;  %p399_p11 = scmp.lt.s32.totalorder %s41_s29, %s41_s29 }
  0x19   :  { %p395_p10 = scmp.ne.s32.totalorder %s41_s29, %s394_s30  ;;  %p400_p12 = scmp.lt.s32.totalorder %s394_s30, %s394_s30 }
  0x1b   :  { %p401_p13 = por %p400_p12, %p399_p11 }
  0x1d   :  { %p402_p0 = pnand %p401_p13, %p395_p10 }
  0x1f   :  { %405 = shalt.err (!%p402_p0)
}
  0x20   :  { %s435_s1 = smov 64   ;;  %s436_s6 = smov 4  }
  0x21   :  { %46 = dma.hbm_to_vmem [thread:$0]  %s491_s3, 1024, %s41_s29, [#allocation6], %s435_s1, %s435_s1, %s436_s6  }
  0x22   :  { %426 = dma.done.wait [#allocation3], 128  }
  0x23   :  { %427 = vsyncadd [#allocation3], 4294967168 }
  0x24   :  { %428 = dma.done.wait [#allocation6], 1152  }
  0x25   :  { %429 = vsyncadd [#allocation6], 4294966144  ;;  %v437_v0 = vmov 0.0   ;;  %vm438_vm0 = vmmov 0   ;;  %vm68_vm1 = vcmask 64512   ;;  %v60_v1 = vld [vmem:[#allocation5] sm:$0xff] }
  0x26   :  { %301 = vmatprep.subr.mxu0 %v437_v0  ;;  %303 = vmatprep.mubr.msk.f32.mxu0 %vm438_vm0, %v437_v0  ;;  %v59_v2 = vld [vmem:[#allocation2] sm:$0xff]  ;;  %v334_v3 = vld [vmem:[#allocation7 + $0x38] sm:$0xff]   ;;  %v336_v5 = vld [vmem:[#allocation7 + $0x28] sm:$0xff]  }
  0x27   :  { %306 = vmatprep.subr.bf16.mxu1 %v437_v0  ;;  %322 = vmatprep.mubr.msk.bf16.mxu1 %vm438_vm0, %v437_v0  ;;  %v335_v4 = vld [vmem:[#allocation7 + $0x30] sm:$0xff]   ;;  %v337_v6 = vld [vmem:[#allocation7 + $0x20] sm:$0xff]   ;;  %v338_v7 = vld [vmem:[#allocation7 + $0x18] sm:$0xff]  }
  0x28   :  { %302 = vmatpush3.msra.mxu0 %v60_v1  ;;  %307 = vmatpush3.bf16.msra.mxu1 %v334_v3  ;;  %v339_v8 = vld [vmem:[#allocation7 + $0x10] sm:$0xff]   ;;  %v340_v9 = vld [vmem:[#allocation7 + $0x8] sm:$0xff]   ;;  %v341_v10 = vld [vmem:[#allocation7] sm:$0xff]  }
  0x29   :  { %304 = vmatmul.mubr.msk.f32.vlgmr.msra.gmra.mxu0 %vm68_vm1, %v59_v2  ;;  %308 = vmatprep.subr.bf16.mxu1 %v437_v0  ;;  %v278_v11 = vld [vmem:[%s490_s2] ss:$0 sm:$0xff]  ;;  %s439_s2 = smov [#allocation8]  }
  0x2a   :  { %v280_v17 = vld [vmem:[%s492_s4] ss:$0 sm:$0xff]  ;;  %s268_s11 = sshll.u32 %s439_s2, 4  ;;  %s269_s11 = int_to_ptr.vmem [resolvable:$true] %s268_s11 }
  0x2b   :  { %s406_s12 = scalar_lea.vmem %s269_s11, 128  ;;  %p411_p2 = scmp.lt.s32.totalorder %s269_s11, %s269_s11 }
  0x2c   :  { %309 = vmatpush3.bf16.msra.mxu1 %v335_v4  ;;  %p407_p1 = scmp.ne.s32.totalorder %s269_s11, %s406_s12  ;;  %p412_p3 = scmp.lt.s32.totalorder %s406_s12, %s406_s12 }
  0x2d   :  { %310 = vmatprep.subr.bf16.mxu1 %v437_v0 }
  0x2e   :  { %p413_p4 = por %p412_p3, %p411_p2 }
  0x30   :  { %311 = vmatpush3.bf16.msra.mxu1 %v336_v5  ;;  %p414_p5 = pnand %p413_p4, %p407_p1 }
  0x31   :  { %312 = vmatprep.subr.bf16.mxu1 %v437_v0 }
  0x34   :  { %313 = vmatpush3.bf16.msra.mxu1 %v337_v6 }
  0x35   :  { %314 = vmatprep.subr.bf16.mxu1 %v437_v0 }
  0x38   :  { %315 = vmatpush3.bf16.msra.mxu1 %v338_v7 }
  0x39   :  { %316 = vmatprep.subr.bf16.mxu1 %v437_v0 }
  0x3c   :  { %317 = vmatpush3.bf16.msra.mxu1 %v339_v8 }
  0x3d   :  { %318 = vmatprep.subr.bf16.mxu1 %v437_v0 }
  0x40   :  { %319 = vmatpush3.bf16.msra.mxu1 %v340_v9 }
  0x41   :  { %320 = vmatprep.subr.bf16.mxu1 %v437_v0 }
  0x44   :  { %321 = vmatpush3.bf16.msra.mxu1 %v341_v10 }
  0xe9   :  { %v138_v12 = vpop.f32.mrf.mxu0 }
  0xea   :  { %v139_v13 = vadd.f32 %v278_v11, %v138_v12 }
  0xeb   :  { %v305_v14 = vpop.f32.mrf.mxu0 }
  0xec   :  { %v142_v15 = vmax.f32 %v139_v13, 0.0 }
  0xee   :  { %v143_v16 = vpack.c.bf16 %v142_v15, %v142_v15 }
  0xf0   :  { %323 = vmatmul.mubr.bf16.vlgmr.msra.gmra.mxu1 %v143_v16 }
 0x1b0   :  { %v249_v18 = vpop.f32.mrf.mxu1 }
 0x1b1   :  { %v250_v19 = vadd.f32 %v280_v17, %v249_v18 }
 0x1b2   :  { %v324_v20 = vpop.f32.mrf.mxu1 }
 0x1b3   :  { %v289_v21 = vmul.f32 -1.442695, %v250_v19 }
 0x1b4   :  { %v252_v22 = vpop.f32.mrf.mxu1 }
 0x1b5   :  { %342 = vpow2.f32 %v289_v21 }
 0x1b6   :  { %v325_v23 = vpop.f32.mrf.mxu1 }
 0x1c2   :  { %v343_v24 = vpop.eup %342 }
 0x1c3   :  { %v258_v25 = vadd.f32 1.0, %v343_v24 }
 0x1c5   :  { %344 = vrcp.f32 %v258_v25 }
 0x1d2   :  { %v345_v26 = vpop.eup %344 }
 0x1d3   :  { %261 = vst [vmem:[#allocation8] sm:$0xff] %v345_v26 }
 0x1d4   :  { %417 = shalt.err (!%p414_p5)
}
 0x1d5   :  { %271 = dma.vmem_to_hbm [thread:$0]  %s269_s11, 128, %s493_s5, [#allocation4]  }
 0x1d6   :  { %430 = dma.done.wait [#allocation4], 128  }
 0x1d7   :  { %431 = vsyncadd [#allocation4], 4294967168 }
 0x1d8   :  { %275 = vsyncpa [#allocation3], 1 }
 0x1d9   :  { %276 = vsyncpa [#allocation6], 1 }
 0x1da   :  { %277 = vsyncpa [#allocation4], 1 }

</bundles_post_ra>
